<compile_context>
chip_gen: v5e
topology: v5e:2x2
jax: 0.10.0
libtpu: 0.0.40
codegen_flags: <defaults>
</compile_context>

<pallas_src>
import jax
import jax.numpy as jnp
from jax.experimental import pallas as pl
from jax.experimental.pallas import tpu as pltpu

EPS = 1e-5
C1, C2, C3 = 32, 64, 128          # fixed STNkd channel widths


# ---------------------------------------------------------------------------
# Kernel
# ---------------------------------------------------------------------------
def stnkd_kernel(x_ref, w1, w2, w3, w4, w5, w6, cb, fb, out_ref):
    # x_ref block: (TILE_B, k, N) in NCL layout -> channels on sublanes,
    # points (N) on lanes.  cb: (224, 1) packed conv biases (BN folded).
    # fb: (3, P) packed fc biases (BN folded; identity folded into row 2).
    x = x_ref[...]
    tb = x.shape[0]
    kk = out_ref.shape[1]

    def conv_bn_relu(h, w_ref, lo, hi):
        # h: (TB, Cin, N); w_ref: (Cout, Cin); cb[lo:hi] is the folded bias.
        w = jnp.broadcast_to(w_ref[...], (tb,) + w_ref.shape)       # (TB,Cout,Cin)
        y = jnp.einsum('boc,bcn->bon', w, h,
                       preferred_element_type=jnp.float32)          # (TB,Cout,N)
        y = y + cb[lo:hi, :][None, :, :]                            # lane-broadcast bias
        return jnp.maximum(y, 0.0)

    h = conv_bn_relu(x, w1, 0, C1)                    # (TB, 32, N)
    h = conv_bn_relu(h, w2, C1, C1 + C2)              # (TB, 64, N)
    h = conv_bn_relu(h, w3, C1 + C2, C1 + C2 + C3)    # (TB, 128, N)

    # Global max-pool over points (lane reduce) -> (TB, 128), channels on lanes.
    g = jnp.max(h, axis=2)

    # Batched FC tail (BN folded; identity folded into fb[2]).
    f = jnp.maximum(
        jnp.dot(g, w4[...], preferred_element_type=jnp.float32) + fb[0:1, :C2], 0.0)
    f = jnp.maximum(
        jnp.dot(f, w5[...], preferred_element_type=jnp.float32) + fb[1:2, :C1], 0.0)
    out_ref[...] = (
        jnp.dot(f, w6[...], preferred_element_type=jnp.float32) + fb[2:3, :kk])


# ---------------------------------------------------------------------------
# Wrapper
# ---------------------------------------------------------------------------
def stnkd_forward(x, p, k, tile_b=8):
    """x: (B, k, N) float32 in PyTorch NCL layout. Returns (B, k, k)."""
    B, C, N = x.shape
    assert C == k
    kk = k * k

    # ---- fold BatchNorm (inference) into preceding weight / bias ----
    def fold(w, b, bn):
        # w: (Cout, Cin), b: (Cout,), bn rows = [mean, var, gamma, beta]
        s = bn[2] * jax.lax.rsqrt(bn[1] + EPS)
        return w * s[:, None], (b - bn[0]) * s + bn[3]

    w1, b1 = fold(p['conv1_w'], p['conv1_b'], p['bn1'])     # (32, k)
    w2, b2 = fold(p['conv2_w'], p['conv2_b'], p['bn2'])     # (64, 32)
    w3, b3 = fold(p['conv3_w'], p['conv3_b'], p['bn3'])     # (128, 64)
    w4, b4 = fold(p['fc1_w'],  p['fc1_b'],  p['bn4'])       # (64, 128)
    w5, b5 = fold(p['fc2_w'],  p['fc2_b'],  p['bn5'])       # (32, 64)
    w6, b6 = p['fc3_w'], p['fc3_b']                         # (kk, 32)

    # FC weights transposed to (Cin, Cout) for right-multiplication; identity
    # matrix folded into the fc3 bias (same add for every batch row).
    w4t, w5t, w6t = w4.T, w5.T, w6.T
    b6i = b6 + jnp.eye(k, dtype=jnp.float32).reshape(kk)

    # Pack small per-layer bias vectors into two arrays.
    cb = jnp.concatenate([b1, b2, b3]).reshape(C1 + C2 + C3, 1)       # (224, 1)
    P = max(128, kk)
    pad_row = lambda v: jnp.pad(v, (0, P - v.shape[0]))[None, :]
    fb = jnp.concatenate([pad_row(b4), pad_row(b5), pad_row(b6i)], 0)  # (3, P)

    # ---- batch tiling (pad B to a multiple of tile_b; pad rows sliced off) ----
    tile_b = max(1, min(tile_b, B))
    B_pad = ((B + tile_b - 1) // tile_b) * tile_b
    xp = jnp.pad(x, ((0, B_pad - B), (0, 0), (0, 0))) if B_pad != B else x

    in_arrays = [xp, w1, w2, w3, w4t, w5t, w6t, cb, fb]

    def full_spec(a):
        nd = a.ndim
        return pl.BlockSpec(a.shape, lambda b, nd=nd: (0,) * nd)

    in_specs = [pl.BlockSpec((tile_b, k, N), lambda b: (b, 0, 0))]
    in_specs += [full_spec(a) for a in in_arrays[1:]]

    out = pl.pallas_call(
        stnkd_kernel,
        out_shape=jax.ShapeDtypeStruct((B_pad, kk), jnp.float32),
        grid=(B_pad // tile_b,),
        in_specs=in_specs,
        out_specs=pl.BlockSpec((tile_b, kk), lambda b: (b, 0)),
        compiler_params=pltpu.CompilerParams(
            dimension_semantics=("parallel",)),   # shards batch tiles across TCs on v7x
    )(*in_arrays)
    return out[:B].reshape(B, k, k)


# ---------------------------------------------------------------------------
# Parameters (PyTorch-like shapes) + pure-JAX reference
# ---------------------------------------------------------------------------
def init_params(key, k):
    keys = jax.random.split(key, 12)

    def layer(kk_, dout, din):
        scale = float(din) ** -0.5
        k1, k2 = jax.random.split(kk_)
        w = jax.random.uniform(k1, (dout, din), jnp.float32, -scale, scale)
        b = jax.random.uniform(k2, (dout,), jnp.float32, -scale, scale)
        return w, b

    def bn(kk_, c):
        k1, k2, k3, k4 = jax.random.split(kk_, 4)
        mean = jax.random.normal(k1, (c,), jnp.float32) * 0.1
        var = jax.random.uniform(k2, (c,), jnp.float32, 0.5, 1.5)
        gamma = 1.0 + jax.random.normal(k3, (c,), jnp.float32) * 0.1
        beta = jax.random.normal(k4, (c,), jnp.float32) * 0.1
        return jnp.stack([mean, var, gamma, beta], axis=0)   # (4, C)

    p = {}
    p['conv1_w'], p['conv1_b'] = layer(keys[0], C1, k);   p['bn1'] = bn(keys[1], C1)
    p['conv2_w'], p['conv2_b'] = layer(keys[2], C2, C1);  p['bn2'] = bn(keys[3], C2)
    p['conv3_w'], p['conv3_b'] = layer(keys[4], C3, C2);  p['bn3'] = bn(keys[5], C3)
    p['fc1_w'],  p['fc1_b']  = layer(keys[6], C2, C3);    p['bn4'] = bn(keys[7], C2)
    p['fc2_w'],  p['fc2_b']  = layer(keys[8], C1, C2);    p['bn5'] = bn(keys[9], C1)
    p['fc3_w'],  p['fc3_b']  = layer(keys[10], k * k, C1)
    return p


def reference_forward(x, p, k):
    """Pure-JAX reference mirroring STNkd.forward (eval-mode BN)."""
    def bn(h, q):
        return (h - q[0]) * jax.lax.rsqrt(q[1] + EPS) * q[2] + q[3]

    xt = jnp.transpose(x, (0, 2, 1))                       # (B, N, k)
    h = jnp.maximum(bn(xt @ p['conv1_w'].T + p['conv1_b'], p['bn1']), 0.0)
    h = jnp.maximum(bn(h @ p['conv2_w'].T + p['conv2_b'], p['bn2']), 0.0)
    h = jnp.maximum(bn(h @ p['conv3_w'].T + p['conv3_b'], p['bn3']), 0.0)
    g = jnp.max(h, axis=1)                                 # (B, 128)
    f = jnp.maximum(bn(g @ p['fc1_w'].T + p['fc1_b'], p['bn4']), 0.0)
    f = jnp.maximum(bn(f @ p['fc2_w'].T + p['fc2_b'], p['bn5']), 0.0)
    f = f @ p['fc3_w'].T + p['fc3_b']
    f = f + jnp.eye(k, dtype=f.dtype).reshape(1, k * k)
    return f.reshape(-1, k, k)


if __name__ == "__main__":
    key = jax.random.PRNGKey(0)
    B, k, N = 2, 4, 16                                     # batch, channels k, points
    kx, kp = jax.random.split(key)
    x = jax.random.normal(kx, (B, k, N), jnp.float32)      # PyTorch NCL input
    params = init_params(kp, k)

    out = jax.block_until_ready(stnkd_forward(x, params, k))
    ref = reference_forward(x, params, k)

    assert out.shape == (B, k, k), out.shape
    assert jnp.allclose(out, ref, atol=1e-4, rtol=1e-4), "mismatch vs reference"

    print("KERNEL_OK")
</pallas_src>

<mosaic_0001>
module attributes {stable_mosaic.version = 11 : i64} {
  func.func @stnkd_kernel(%arg0: i32, %arg1: memref<2x4x16xf32, #tpu.memory_space<vmem>>, %arg2: memref<32x4xf32, #tpu.memory_space<vmem>>, %arg3: memref<64x32xf32, #tpu.memory_space<vmem>>, %arg4: memref<128x64xf32, #tpu.memory_space<vmem>>, %arg5: memref<128x64xf32, #tpu.memory_space<vmem>>, %arg6: memref<64x32xf32, #tpu.memory_space<vmem>>, %arg7: memref<32x16xf32, #tpu.memory_space<vmem>>, %arg8: memref<224x1xf32, #tpu.memory_space<vmem>>, %arg9: memref<3x128xf32, #tpu.memory_space<vmem>>, %arg10: memref<2x16xf32, #tpu.memory_space<vmem>>) attributes {dimension_semantics = [#tpu.dimension_semantics<parallel>], iteration_bounds = array<i64: 1>, scalar_prefetch = 0 : i64, scratch_operands = 0 : i64, tpu.core_type = #tpu.core_type<tc>, window_params = [{transform_indices = @transform_0, window_bounds = array<i64: 2, 4, 16>}, {pipeline_mode = #tpu.pipeline_mode<synchronous>, transform_indices = @transform_1, window_bounds = array<i64: 32, 4>}, {pipeline_mode = #tpu.pipeline_mode<synchronous>, transform_indices = @transform_2, window_bounds = array<i64: 64, 32>}, {pipeline_mode = #tpu.pipeline_mode<synchronous>, transform_indices = @transform_3, window_bounds = array<i64: 128, 64>}, {pipeline_mode = #tpu.pipeline_mode<synchronous>, transform_indices = @transform_4, window_bounds = array<i64: 128, 64>}, {pipeline_mode = #tpu.pipeline_mode<synchronous>, transform_indices = @transform_5, window_bounds = array<i64: 64, 32>}, {pipeline_mode = #tpu.pipeline_mode<synchronous>, transform_indices = @transform_6, window_bounds = array<i64: 32, 16>}, {pipeline_mode = #tpu.pipeline_mode<synchronous>, transform_indices = @transform_7, window_bounds = array<i64: 224, 1>}, {pipeline_mode = #tpu.pipeline_mode<synchronous>, transform_indices = @transform_8, window_bounds = array<i64: 3, 128>}, {transform_indices = @transform_9, window_bounds = array<i64: 2, 16>}]} {
    %c0 = arith.constant 0 : index
    %c0_0 = arith.constant 0 : index
    %c0_1 = arith.constant 0 : index
    %0 = vector.load %arg1[%c0, %c0_0, %c0_1] : memref<2x4x16xf32, #tpu.memory_space<vmem>>, vector<2x4x16xf32>
    %c0_2 = arith.constant 0 : index
    %c0_3 = arith.constant 0 : index
    %1 = vector.load %arg2[%c0_2, %c0_3] : memref<32x4xf32, #tpu.memory_space<vmem>>, vector<32x4xf32>
    %2 = vector.shape_cast %1 : vector<32x4xf32> to vector<1x32x4xf32>
    %3 = vector.broadcast %2 : vector<1x32x4xf32> to vector<2x32x4xf32>
    "tpu.trace_start"() <{level = 10 : i32, message = "boc,bcn->bon"}> : () -> ()
    %cst = arith.constant dense<0.000000e+00> : vector<2x32x16xf32>
    %4 = tpu.matmul %3, %0, %cst {dimension_numbers = #tpu.dot_dimension_numbers<[2], [1], [1], [2], [0, 0, 0, 1, 1, 2], [0], [0]>} : vector<2x32x4xf32>, vector<2x4x16xf32>, vector<2x32x16xf32> -> vector<2x32x16xf32>
    "tpu.trace_stop"() : () -> ()
    %c0_4 = arith.constant 0 : index
    %c0_5 = arith.constant 0 : index
    %5 = vector.load %arg8[%c0_4, %c0_5] : memref<224x1xf32, #tpu.memory_space<vmem>>, vector<32x1xf32>
    %6 = vector.shape_cast %5 : vector<32x1xf32> to vector<1x32x1xf32>
    %7 = vector.broadcast %6 : vector<1x32x1xf32> to vector<2x32x16xf32>
    %8 = arith.addf %4, %7 : vector<2x32x16xf32>
    %cst_6 = arith.constant 0.000000e+00 : f32
    %9 = vector.broadcast %cst_6 : f32 to vector<2x32x16xf32>
    %10 = arith.maximumf %8, %9 : vector<2x32x16xf32>
    %c0_7 = arith.constant 0 : index
    %c0_8 = arith.constant 0 : index
    %11 = vector.load %arg3[%c0_7, %c0_8] : memref<64x32xf32, #tpu.memory_space<vmem>>, vector<64x32xf32>
    %12 = vector.shape_cast %11 : vector<64x32xf32> to vector<1x64x32xf32>
    %13 = vector.broadcast %12 : vector<1x64x32xf32> to vector<2x64x32xf32>
    "tpu.trace_start"() <{level = 10 : i32, message = "boc,bcn->bon"}> : () -> ()
    %cst_9 = arith.constant dense<0.000000e+00> : vector<2x64x16xf32>
    %14 = tpu.matmul %13, %10, %cst_9 {dimension_numbers = #tpu.dot_dimension_numbers<[2], [1], [1], [2], [0, 0, 0, 1, 1, 2], [0], [0]>} : vector<2x64x32xf32>, vector<2x32x16xf32>, vector<2x64x16xf32> -> vector<2x64x16xf32>
    "tpu.trace_stop"() : () -> ()
    %c32 = arith.constant 32 : index
    %c0_10 = arith.constant 0 : index
    %15 = vector.load %arg8[%c32, %c0_10] : memref<224x1xf32, #tpu.memory_space<vmem>>, vector<64x1xf32>
    %16 = vector.shape_cast %15 : vector<64x1xf32> to vector<1x64x1xf32>
    %17 = vector.broadcast %16 : vector<1x64x1xf32> to vector<2x64x16xf32>
    %18 = arith.addf %14, %17 : vector<2x64x16xf32>
    %cst_11 = arith.constant 0.000000e+00 : f32
    %19 = vector.broadcast %cst_11 : f32 to vector<2x64x16xf32>
    %20 = arith.maximumf %18, %19 : vector<2x64x16xf32>
    %c0_12 = arith.constant 0 : index
    %c0_13 = arith.constant 0 : index
    %21 = vector.load %arg4[%c0_12, %c0_13] : memref<128x64xf32, #tpu.memory_space<vmem>>, vector<128x64xf32>
    %22 = vector.shape_cast %21 : vector<128x64xf32> to vector<1x128x64xf32>
    %23 = vector.broadcast %22 : vector<1x128x64xf32> to vector<2x128x64xf32>
    "tpu.trace_start"() <{level = 10 : i32, message = "boc,bcn->bon"}> : () -> ()
    %cst_14 = arith.constant dense<0.000000e+00> : vector<2x128x16xf32>
    %24 = tpu.matmul %23, %20, %cst_14 {dimension_numbers = #tpu.dot_dimension_numbers<[2], [1], [1], [2], [0, 0, 0, 1, 1, 2], [0], [0]>} : vector<2x128x64xf32>, vector<2x64x16xf32>, vector<2x128x16xf32> -> vector<2x128x16xf32>
    "tpu.trace_stop"() : () -> ()
    %c96 = arith.constant 96 : index
    %c0_15 = arith.constant 0 : index
    %25 = vector.load %arg8[%c96, %c0_15] : memref<224x1xf32, #tpu.memory_space<vmem>>, vector<128x1xf32>
    %26 = vector.shape_cast %25 : vector<128x1xf32> to vector<1x128x1xf32>
    %27 = vector.broadcast %26 : vector<1x128x1xf32> to vector<2x128x16xf32>
    %28 = arith.addf %24, %27 : vector<2x128x16xf32>
    %cst_16 = arith.constant 0.000000e+00 : f32
    %29 = vector.broadcast %cst_16 : f32 to vector<2x128x16xf32>
    %30 = arith.maximumf %28, %29 : vector<2x128x16xf32>
    %cst_17 = arith.constant dense<0xFF800000> : vector<2x128xf32>
    %31 = vector.multi_reduction <maximumf>, %30, %cst_17 [2] : vector<2x128x16xf32> to vector<2x128xf32>
    %c0_18 = arith.constant 0 : index
    %c0_19 = arith.constant 0 : index
    %32 = vector.load %arg5[%c0_18, %c0_19] : memref<128x64xf32, #tpu.memory_space<vmem>>, vector<128x64xf32>
    %cst_20 = arith.constant dense<0.000000e+00> : vector<2x64xf32>
    %33 = tpu.matmul %31, %32, %cst_20 {dimension_numbers = #tpu.dot_dimension_numbers<[1], [0], [0], [1], [0, 0, 1, 1], [], []>} : vector<2x128xf32>, vector<128x64xf32>, vector<2x64xf32> -> vector<2x64xf32>
    %c0_21 = arith.constant 0 : index
    %c0_22 = arith.constant 0 : index
    %34 = vector.load %arg9[%c0_21, %c0_22] : memref<3x128xf32, #tpu.memory_space<vmem>>, vector<1x64xf32>
    %35 = vector.broadcast %34 : vector<1x64xf32> to vector<2x64xf32>
    %36 = arith.addf %33, %35 : vector<2x64xf32>
    %cst_23 = arith.constant 0.000000e+00 : f32
    %37 = vector.broadcast %cst_23 : f32 to vector<2x64xf32>
    %38 = arith.maximumf %36, %37 : vector<2x64xf32>
    %c0_24 = arith.constant 0 : index
    %c0_25 = arith.constant 0 : index
    %39 = vector.load %arg6[%c0_24, %c0_25] : memref<64x32xf32, #tpu.memory_space<vmem>>, vector<64x32xf32>
    %cst_26 = arith.constant dense<0.000000e+00> : vector<2x32xf32>
    %40 = tpu.matmul %38, %39, %cst_26 {dimension_numbers = #tpu.dot_dimension_numbers<[1], [0], [0], [1], [0, 0, 1, 1], [], []>} : vector<2x64xf32>, vector<64x32xf32>, vector<2x32xf32> -> vector<2x32xf32>
    %c1 = arith.constant 1 : index
    %c0_27 = arith.constant 0 : index
    %41 = vector.load %arg9[%c1, %c0_27] : memref<3x128xf32, #tpu.memory_space<vmem>>, vector<1x32xf32>
    %42 = vector.broadcast %41 : vector<1x32xf32> to vector<2x32xf32>
    %43 = arith.addf %40, %42 : vector<2x32xf32>
    %cst_28 = arith.constant 0.000000e+00 : f32
    %44 = vector.broadcast %cst_28 : f32 to vector<2x32xf32>
    %45 = arith.maximumf %43, %44 : vector<2x32xf32>
    %c0_29 = arith.constant 0 : index
    %c0_30 = arith.constant 0 : index
    %46 = vector.load %arg7[%c0_29, %c0_30] : memref<32x16xf32, #tpu.memory_space<vmem>>, vector<32x16xf32>
    %cst_31 = arith.constant dense<0.000000e+00> : vector<2x16xf32>
    %47 = tpu.matmul %45, %46, %cst_31 {dimension_numbers = #tpu.dot_dimension_numbers<[1], [0], [0], [1], [0, 0, 1, 1], [], []>} : vector<2x32xf32>, vector<32x16xf32>, vector<2x16xf32> -> vector<2x16xf32>
    %c2 = arith.constant 2 : index
    %c0_32 = arith.constant 0 : index
    %48 = vector.load %arg9[%c2, %c0_32] : memref<3x128xf32, #tpu.memory_space<vmem>>, vector<1x16xf32>
    %49 = vector.broadcast %48 : vector<1x16xf32> to vector<2x16xf32>
    %50 = arith.addf %47, %49 : vector<2x16xf32>
    %c0_33 = arith.constant 0 : index
    %c0_34 = arith.constant 0 : index
    %51 = vector.load %arg10[%c0_33, %c0_34] : memref<2x16xf32, #tpu.memory_space<vmem>>, vector<2x16xf32>
    tpu.vector_store %arg10[%c0_33, %c0_34], %50 {strides = array<i32>} : memref<2x16xf32, #tpu.memory_space<vmem>>, vector<2x16xf32>,
    return
  }
  func.func @transform_0(%arg0: i32) -> (i32, i32, i32) {
    %c0_i32 = arith.constant 0 : i32
    %c0_i32_0 = arith.constant 0 : i32
    %c0_i32_1 = arith.constant 0 : i32
    return %arg0, %c0_i32, %c0_i32_0 : i32, i32, i32
  }
  func.func @transform_1(%arg0: i32) -> (i32, i32) {
    %c0_i32 = arith.constant 0 : i32
    %c0_i32_0 = arith.constant 0 : i32
    %c0_i32_1 = arith.constant 0 : i32
    return %c0_i32, %c0_i32_0 : i32, i32
  }
  func.func @transform_2(%arg0: i32) -> (i32, i32) {
    %c0_i32 = arith.constant 0 : i32
    %c0_i32_0 = arith.constant 0 : i32
    %c0_i32_1 = arith.constant 0 : i32
    return %c0_i32, %c0_i32_0 : i32, i32
  }
  func.func @transform_3(%arg0: i32) -> (i32, i32) {
    %c0_i32 = arith.constant 0 : i32
    %c0_i32_0 = arith.constant 0 : i32
    %c0_i32_1 = arith.constant 0 : i32
    return %c0_i32, %c0_i32_0 : i32, i32
  }
  func.func @transform_4(%arg0: i32) -> (i32, i32) {
    %c0_i32 = arith.constant 0 : i32
    %c0_i32_0 = arith.constant 0 : i32
    %c0_i32_1 = arith.constant 0 : i32
    return %c0_i32, %c0_i32_0 : i32, i32
  }
  func.func @transform_5(%arg0: i32) -> (i32, i32) {
    %c0_i32 = arith.constant 0 : i32
    %c0_i32_0 = arith.constant 0 : i32
    %c0_i32_1 = arith.constant 0 : i32
    return %c0_i32, %c0_i32_0 : i32, i32
  }
  func.func @transform_6(%arg0: i32) -> (i32, i32) {
    %c0_i32 = arith.constant 0 : i32
    %c0_i32_0 = arith.constant 0 : i32
    %c0_i32_1 = arith.constant 0 : i32
    return %c0_i32, %c0_i32_0 : i32, i32
  }
  func.func @transform_7(%arg0: i32) -> (i32, i32) {
    %c0_i32 = arith.constant 0 : i32
    %c0_i32_0 = arith.constant 0 : i32
    %c0_i32_1 = arith.constant 0 : i32
    return %c0_i32, %c0_i32_0 : i32, i32
  }
  func.func @transform_8(%arg0: i32) -> (i32, i32) {
    %c0_i32 = arith.constant 0 : i32
    %c0_i32_0 = arith.constant 0 : i32
    %c0_i32_1 = arith.constant 0 : i32
    return %c0_i32, %c0_i32_0 : i32, i32
  }
  func.func @transform_9(%arg0: i32) -> (i32, i32) {
    %c0_i32 = arith.constant 0 : i32
    %c0_i32_0 = arith.constant 0 : i32
    return %arg0, %c0_i32 : i32, i32
  }
}

</mosaic_0001>

<bundles_post_ra>
// kernel: tpu_custom_call.1
= control target key start
LH: loop header
LB: loop body
LE: loop exit
PB: predicated region body
PF: predicated region fallthrough
CT: control target
= control target key end

     0   :  { %vm76_vm0 = vcmask 1043456   ;;  %v1116_v2 = vmov 0   ;;  %vm63_vm1 = vcmask 31744   ;;  %s1700_s0 = inlined_call_operand.vmem [shape: f32[2,4,16], index: 0, kind: input, shape index: {}]   ;;  %s1701_s1 = inlined_call_operand.vmem [shape: f32[32,4], index: 1, kind: input, shape index: {}]   ;;  %s1702_s2 = inlined_call_operand.vmem [shape: f32[64,32], index: 2, kind: input, shape index: {}]   ;;  %s1703_s3 = inlined_call_operand.vmem [shape: f32[128,64], index: 3, kind: input, shape index: {}]   ;;  %s1704_s4 = inlined_call_operand.vmem [shape: f32[128,64], index: 4, kind: input, shape index: {}]   ;;  %s1705_s5 = inlined_call_operand.vmem [shape: f32[64,32], index: 5, kind: input, shape index: {}]   ;;  %s1706_s6 = inlined_call_operand.vmem [shape: f32[32,16], index: 6, kind: input, shape index: {}]   ;;  %s1707_s7 = inlined_call_operand.vmem [shape: f32[224,1], index: 7, kind: input, shape index: {}]   ;;  %s1708_s8 = inlined_call_operand.vmem [shape: f32[3,128], index: 8, kind: input, shape index: {}]   ;;  %s1709_s9 = inlined_call_operand.hbm [shape: f32[2,16], index: 9, kind: output, shape index: {}]  }
   0x1   :  { %v33_v0 = vld [vmem:[%s1700_s0] sm:$0xf]  ;;  %v34_v1 = vld [vmem:[%s1700_s0 + $0x4] sm:$0xf]  ;;  %1085 = vset.pattern.permute.xlu1 %v1116_v2  ;;  %1084 = vset.pattern.permute.xlu0 %v1116_v2  ;;  %v42_v3 = vld [vmem:[%s1707_s7 + $0x18] sm:$0xff] }
   0x2   :  { %v40_v4 = vld [vmem:[%s1707_s7 + $0x8] sm:$0xff]  ;;  %v37_v5 = vld [vmem:[%s1701_s1 + $0x10] sm:$0xff]  ;;  %1057 = vmatpush.msk.msra.mxu3 %vm76_vm0, %v33_v0  ;;  %1002 = vmatpush.msk.msra.mxu1 %vm76_vm0, %v34_v1  ;;  %v35_v6 = vld [vmem:[%s1701_s1] sm:$0xff] }
   0x3   :  { %60 = vperm.xlu0 %1084, %v42_v3   ;;  %50 = vperm.xlu1 %1085, %v40_v4  }
   0x4   :  { %1000 = vmatmul.msk.f32.vlgmr.msra.gmra.mxu3 %vm63_vm1, %v37_v5  ;;  %1003 = vmatmul.msk.f32.vlgmr.msra.gmra.mxu1 %vm63_vm1, %v35_v6 }
   0x5   :  { %997 = vmatpush.msk.msra.mxu0 %vm76_vm0, %v33_v0  ;;  %1086 = vset.pattern.permute.xlu2 %v1116_v2 }
   0x6   :  { %998 = vmatmul.msk.f32.vlgmr.msra.gmra.mxu0 %vm63_vm1, %v35_v6 }
   0x7   :  { %14 = vsyncpa [#allocation3], 0  ;;  %v41_v7 = vld [vmem:[%s1707_s7 + $0x10] sm:$0xff]  ;;  %v39_v8 = vld [vmem:[%s1707_s7] sm:$0xff]  ;;  %vm205_vm2 = vcmask 261120   ;;  %vm440_vm3 = vcmask 523264  }
   0x8   :  { %v38_v9 = vld [vmem:[%s1701_s1 + $0x18] sm:$0xff]  ;;  %v36_v10 = vld [vmem:[%s1701_s1 + $0x8] sm:$0xff]  ;;  %v161_v12 = vld [vmem:[%s1707_s7 + $0x40] sm:$0xff]  ;;  %vm651_vm4 = vcmask 130048   ;;  %vm803_vm5 = vcmask 130112   ;;  %vm807_vm6 = vcmask 195712  }
   0x9   :  { %v162_v11 = vld [vmem:[%s1707_s7 + $0x48] sm:$0xff]  ;;  %v159_v13 = vld [vmem:[%s1707_s7 + $0x30] sm:$0xff]  ;;  %v344_v15 = vld [vmem:[%s1707_s7 + $0x60] sm:$0xff]  ;;  %vm811_vm7 = vcmask 261312   ;;  %vm815_vm8 = vcmask 326912   ;;  %vm819_vm9 = vcmask 392512  }
   0xa   :  { %v158_v14 = vld [vmem:[%s1707_s7 + $0x28] sm:$0xff]  ;;  %v347_v17 = vld [vmem:[%s1707_s7 + $0x78] sm:$0xff]  ;;  %v348_v18 = vld [vmem:[%s1707_s7 + $0x80] sm:$0xff]  ;;  %vm823_vm10 = vcmask 458112   ;;  %vm827_vm11 = vcmask 523712   ;;  %vm831_vm12 = vcmask 589312  }
   0xb   :  { %55 = vperm.xlu0 %1084, %v41_v7   ;;  %45 = vperm.xlu1 %1085, %v39_v8   ;;  %v345_v16 = vld [vmem:[%s1707_s7 + $0x68] sm:$0xff]  ;;  %v350_v19 = vld [vmem:[%s1707_s7 + $0x90] sm:$0xff]  ;;  %v351_v20 = vld [vmem:[%s1707_s7 + $0x98] sm:$0xff]  ;;  %vm835_vm13 = vcmask 654912   ;;  %vm839_vm14 = vcmask 720512   ;;  %vm843_vm15 = vcmask 786112  }
   0xc   :  { %1001 = vmatmul.msk.f32.gmra.mxu3 %vm63_vm1, %v38_v9  ;;  %1004 = vmatmul.msk.f32.gmra.mxu1 %vm63_vm1, %v36_v10  ;;  %v353_v21 = vld [vmem:[%s1707_s7 + $0xa8] sm:$0xff]  ;;  %v354_v22 = vld [vmem:[%s1707_s7 + $0xb0] sm:$0xff]  ;;  %v356_v23 = vld [vmem:[%s1707_s7 + $0xc0] sm:$0xff]  ;;  %vm847_vm0 = vcmask 851712   ;;  %s1117_s13 = smov [#allocation2]  }
   0xd   :  { %v357_v24 = vld [vmem:[%s1707_s7 + $0xc8] sm:$0xff]  ;;  %v359_v25 = vld [vmem:[%s1707_s7 + $0xd8] sm:$0xff]  ;;  %v163_v42 = vld [vmem:[%s1707_s7 + $0x50] sm:$0xff]  ;;  %s986_s14 = sshll.u32 %s1117_s13, 4  ;;  %s987_s14 = int_to_ptr.vmem [resolvable:$true] %s986_s14 }
   0xe   :  { %999 = vmatmul.msk.f32.gmra.mxu0 %vm63_vm1, %v36_v10  ;;  %v164_v32 = vld [vmem:[%s1707_s7 + $0x58] sm:$0xff]  ;;  %v149_v47 = vld [vmem:[%s1702_s2] sm:$0xff]  ;;  %v150_v57 = vld [vmem:[%s1702_s2 + $0x8] sm:$0xff] }
   0xf   :  { %202 = vperm.xlu2 %1086, %v164_v32   ;;  %v160_v51 = vld [vmem:[%s1707_s7 + $0x38] sm:$0xff]  ;;  %v157_v59 = vld [vmem:[%s1707_s7 + $0x20] sm:$0xff]  ;;  %v151_v60 = vld [vmem:[%s1702_s2 + $0x10] sm:$0xff] }
  0x10   :  { %v152_v61 = vld [vmem:[%s1702_s2 + $0x18] sm:$0xff]  ;;  %v346_v62 = vld [vmem:[%s1707_s7 + $0x70] sm:$0xff]  ;;  %v153_v63 = vld [vmem:[%s1702_s2 + $0x20] sm:$0xff] }
  0x11   :  { %v349_v0 = vld [vmem:[%s1707_s7 + $0x88] sm:$0xff]  ;;  %v352_v1 = vld [vmem:[%s1707_s7 + $0xa0] sm:$0xff]  ;;  %v355_v3 = vld [vmem:[%s1707_s7 + $0xb8] sm:$0xff] }
  0x12   :  { %v154_v2 = vld [vmem:[%s1702_s2 + $0x28] sm:$0xff]  ;;  %v155_v4 = vld [vmem:[%s1702_s2 + $0x30] sm:$0xff]  ;;  %v156_v6 = vld [vmem:[%s1702_s2 + $0x38] sm:$0xff] }
  0x13   :  { %192 = vperm.xlu0 %1084, %v162_v11   ;;  %187 = vperm.xlu1 %1085, %v161_v12  }
  0x14   :  { %1005 = vmatmul.msk.f32.gmra.mxu1 %vm63_vm1, %v37_v5  ;;  %v358_v5 = vld [vmem:[%s1707_s7 + $0xd0] sm:$0xff] }
  0x17   :  { %197 = vperm.xlu2 %1086, %v163_v42  }
  0x1b   :  { %177 = vperm.xlu0 %1084, %v159_v13   ;;  %172 = vperm.xlu1 %1085, %v158_v14  }
  0x1c   :  { %1006 = vmatmul.msk.f32.gmra.mxu1 %vm63_vm1, %v38_v9  ;;  %vm851_vm1 = vcmask 917312  }
  0x1f   :  { %182 = vperm.xlu2 %1086, %v160_v51  }
  0x23   :  { %362 = vperm.xlu0 %1084, %v344_v15   ;;  %367 = vperm.xlu1 %1085, %v345_v16  }
  0x27   :  { %167 = vperm.xlu2 %1086, %v157_v59  }
  0x2b   :  { %377 = vperm.xlu0 %1084, %v347_v17   ;;  %382 = vperm.xlu1 %1085, %v348_v18  }
  0x2f   :  { %372 = vperm.xlu2 %1086, %v346_v62  }
  0x33   :  { %392 = vperm.xlu0 %1084, %v350_v19   ;;  %397 = vperm.xlu1 %1085, %v351_v20  }
  0x37   :  { %387 = vperm.xlu2 %1086, %v349_v0   ;;  %v329_v0 = vld [vmem:[%s1703_s3 + $0x8] sm:$0xff] }
  0x3b   :  { %407 = vperm.xlu0 %1084, %v353_v21   ;;  %412 = vperm.xlu1 %1085, %v354_v22  }
  0x3f   :  { %402 = vperm.xlu2 %1086, %v352_v1   ;;  %v341_v1 = vld [vmem:[%s1703_s3 + $0x68] sm:$0xff] }
  0x43   :  { %422 = vperm.xlu0 %1084, %v356_v23   ;;  %427 = vperm.xlu1 %1085, %v357_v24  }
  0x47   :  { %417 = vperm.xlu2 %1086, %v355_v3   ;;  %v330_v3 = vld [vmem:[%s1703_s3 + $0x10] sm:$0xff] }
  0x4b   :  { %437 = vperm.xlu0 %1084, %v359_v25  }
  0x4f   :  { %432 = vperm.xlu2 %1086, %v358_v5   ;;  %v331_v5 = vld [vmem:[%s1703_s3 + $0x18] sm:$0xff] }
  0x69   :  { %v203_v16 = vpop.permute.xlu2 %202 }
  0x71   :  { %v198_v19 = vpop.permute.xlu2 %197 }
  0x75   :  { %v61_v27 = vpop.permute.xlu0 %60  ;;  %v51_v30 = vpop.permute.xlu1 %50 }
  0x79   :  { %v183_v24 = vpop.permute.xlu2 %182 }
  0x7d   :  { %v56_v33 = vpop.permute.xlu0 %55  ;;  %v46_v41 = vpop.permute.xlu1 %45 }
  0x81   :  { %v129_v26 = vpop.f32.mrf.mxu1 }
  0x82   :  { %v130_v54 = vadd.f32 %v129_v26, %v46_v41 }
  0x83   :  { %v97_v28 = vpop.f32.mrf.mxu0 }
  0x84   :  { %v98_v43 = vadd.f32 %v97_v28, %v46_v41  ;;  %v145_v58 = vmax.f32 %v130_v54, 0.0 }
  0x85   :  { %v193_v22 = vpop.permute.xlu0 %192  ;;  %v188_v23 = vpop.permute.xlu1 %187 }
  0x86   :  { %v141_v46 = vmax.f32 %v98_v43, 0.0 }
  0x87   :  { %v103_v29 = vpop.f32.mrf.mxu3 }
  0x88   :  { %v104_v36 = vadd.f32 %v103_v29, %v56_v33 }
  0x89   :  { %v132_v31 = vpop.f32.mrf.mxu1 }
  0x8a   :  { %v143_v44 = vmax.f32 %v104_v36, 0.0  ;;  %v133_v52 = vadd.f32 %v132_v31, %v51_v30 }
  0x8b   :  { %v100_v34 = vpop.f32.mrf.mxu0 }
  0x8c   :  { %v101_v39 = vadd.f32 %v100_v34, %v51_v30  ;;  %v146_v56 = vmax.f32 %v133_v52, 0.0 }
  0x8d   :  { %v173_v36 = vpop.permute.xlu1 %172 }
  0x8e   :  { %v142_v45 = vmax.f32 %v101_v39, 0.0  ;;  %v168_v39 = vpop.permute.xlu2 %167 }
  0x8f   :  { %v106_v35 = vpop.f32.mrf.mxu3 }
  0x90   :  { %v107_v37 = vadd.f32 %v106_v35, %v61_v27  ;;  %v178_v35 = vpop.permute.xlu0 %177 }
  0x91   :  { %v135_v38 = vpop.f32.mrf.mxu1 }
  0x92   :  { %v144_v40 = vmax.f32 %v107_v37, 0.0  ;;  %v136_v49 = vadd.f32 %v135_v38, %v56_v33 }
  0x94   :  { %242 = vmatpush.msra.mxu2 %v144_v40  ;;  %v147_v55 = vmax.f32 %v136_v49, 0.0 }
  0x96   :  { %243 = vmatpush.msra.mxu2 %v143_v44 }
  0x98   :  { %244 = vmatpush.msra.mxu2 %v142_v45 }
  0x99   :  { %v138_v48 = vpop.f32.mrf.mxu1 }
  0x9a   :  { %v139_v50 = vadd.f32 %v138_v48, %v61_v27  ;;  %245 = vmatpush.msra.mxu2 %v141_v46 }
  0x9b   :  { %1007 = vmatmul.msk.f32.vlgmr.msra.gmra.mxu2 %vm205_vm2, %v149_v47 }
  0x9c   :  { %v148_v53 = vmax.f32 %v139_v50, 0.0 }
  0x9e   :  { %283 = vmatpush.msrb.mxu3 %v148_v53 }
  0xa0   :  { %284 = vmatpush.msrb.mxu3 %v147_v55  ;;  %v1330_v55 = vld [vmem:[%s1703_s3] sm:$0xff] }
  0xa2   :  { %285 = vmatpush.msrb.mxu3 %v146_v56  ;;  %v340_v56 = vld [vmem:[%s1703_s3 + $0x60] sm:$0xff] }
  0xa3   :  { %1008 = vmatmul.msk.f32.gmra.mxu2 %vm205_vm2, %v150_v57 }
  0xa4   :  { %286 = vmatpush.msrb.mxu3 %v145_v58 }
  0xa5   :  { %1015 = vmatmul.msk.f32.vlgmr.msrb.gmra.mxu3 %vm205_vm2, %v149_v47 }
  0xab   :  { %1009 = vmatmul.msk.f32.gmra.mxu2 %vm205_vm2, %v151_v60 }
  0xad   :  { %1016 = vmatmul.msk.f32.gmra.mxu3 %vm205_vm2, %v150_v57 }
  0xb3   :  { %1010 = vmatmul.msk.f32.gmra.mxu2 %vm205_vm2, %v152_v61 }
  0xb5   :  { %1017 = vmatmul.msk.f32.gmra.mxu3 %vm205_vm2, %v151_v60 }
  0xbb   :  { %1011 = vmatmul.msk.f32.gmra.mxu2 %vm205_vm2, %v153_v63 }
  0xbd   :  { %1018 = vmatmul.msk.f32.gmra.mxu3 %vm205_vm2, %v152_v61 }
  0xc3   :  { %1012 = vmatmul.msk.f32.gmra.mxu2 %vm205_vm2, %v154_v2 }
  0xc5   :  { %1019 = vmatmul.msk.f32.gmra.mxu3 %vm205_vm2, %v153_v63 }
  0xcb   :  { %1013 = vmatmul.msk.f32.gmra.mxu2 %vm205_vm2, %v155_v4 }
  0xcd   :  { %1020 = vmatmul.msk.f32.gmra.mxu3 %vm205_vm2, %v154_v2 }
  0xd3   :  { %1014 = vmatmul.msk.f32.gmra.mxu2 %vm205_vm2, %v156_v6 }
  0xd5   :  { %1021 = vmatmul.msk.f32.gmra.mxu3 %vm205_vm2, %v155_v4  ;;  %v342_v4 = vld [vmem:[%s1703_s3 + $0x70] sm:$0xff] }
  0xdd   :  { %1022 = vmatmul.msk.f32.gmra.mxu3 %vm205_vm2, %v156_v6  ;;  %v343_v6 = vld [vmem:[%s1703_s3 + $0x78] sm:$0xff] }
 0x11e   :  { %v247_v7 = vpop.f32.mrf.mxu2 }
 0x11f   :  { %v248_v45 = vadd.f32 %v247_v7, %v168_v39  ;;  %v332_v7 = vld [vmem:[%s1703_s3 + $0x20] sm:$0xff] }
 0x121   :  { %v312_v52 = vmax.f32 %v248_v45, 0.0 }
 0x126   :  { %v250_v8 = vpop.f32.mrf.mxu2 }
 0x127   :  { %v251_v41 = vadd.f32 %v250_v8, %v173_v36  ;;  %v333_v8 = vld [vmem:[%s1703_s3 + $0x28] sm:$0xff] }
 0x128   :  { %v1321_v9 = vpop.f32.mrf.mxu3 }
 0x129   :  { %v313_v49 = vmax.f32 %v251_v41, 0.0  ;;  %v289_v62 = vadd.f32 %v1321_v9, %v168_v39  ;;  %v334_v9 = vld [vmem:[%s1703_s3 + $0x30] sm:$0xff] }
 0x12b   :  { %v320_v2 = vmax.f32 %v289_v62, 0.0 }
 0x12e   :  { %v253_v10 = vpop.f32.mrf.mxu2 }
 0x12f   :  { %v254_v37 = vadd.f32 %v253_v10, %v178_v35  ;;  %v335_v10 = vld [vmem:[%s1703_s3 + $0x38] sm:$0xff] }
 0x130   :  { %v1323_v11 = vpop.f32.mrf.mxu3 }
 0x131   :  { %v314_v46 = vmax.f32 %v254_v37, 0.0  ;;  %v292_v59 = vadd.f32 %v1323_v11, %v173_v36  ;;  %v336_v11 = vld [vmem:[%s1703_s3 + $0x40] sm:$0xff] }
 0x133   :  { %v321_v63 = vmax.f32 %v292_v59, 0.0 }
 0x136   :  { %v256_v12 = vpop.f32.mrf.mxu2 }
 0x137   :  { %v257_v33 = vadd.f32 %v256_v12, %v183_v24  ;;  %v337_v12 = vld [vmem:[%s1703_s3 + $0x48] sm:$0xff] }
 0x138   :  { %v1325_v13 = vpop.f32.mrf.mxu3 }
 0x139   :  { %v315_v42 = vmax.f32 %v257_v33, 0.0  ;;  %v295_v57 = vadd.f32 %v1325_v13, %v178_v35  ;;  %v338_v13 = vld [vmem:[%s1703_s3 + $0x50] sm:$0xff] }
 0x13b   :  { %v322_v61 = vmax.f32 %v295_v57, 0.0 }
 0x13e   :  { %v259_v14 = vpop.f32.mrf.mxu2 }
 0x13f   :  { %v260_v31 = vadd.f32 %v259_v14, %v188_v23  ;;  %v339_v14 = vld [vmem:[%s1703_s3 + $0x58] sm:$0xff] }
 0x140   :  { %v297_v15 = vpop.f32.mrf.mxu3 }
 0x141   :  { %v316_v38 = vmax.f32 %v260_v31, 0.0  ;;  %v298_v53 = vadd.f32 %v297_v15, %v183_v24  ;;  %v1411_v15 = vpop.permute.xlu0 %362 }
 0x143   :  { %v323_v60 = vmax.f32 %v298_v53, 0.0 }
 0x146   :  { %v262_v17 = vpop.f32.mrf.mxu2 }
 0x147   :  { %v263_v29 = vadd.f32 %v262_v17, %v193_v22  ;;  %v368_v17 = vpop.permute.xlu1 %367 }
 0x148   :  { %v300_v18 = vpop.f32.mrf.mxu3 }
 0x149   :  { %v317_v34 = vmax.f32 %v263_v29, 0.0  ;;  %v301_v50 = vadd.f32 %v300_v18, %v188_v23 }
 0x14b   :  { %v324_v58 = vmax.f32 %v301_v50, 0.0 }
 0x14e   :  { %v265_v20 = vpop.f32.mrf.mxu2 }
 0x14f   :  { %v266_v26 = vadd.f32 %v265_v20, %v198_v19 }
 0x150   :  { %v303_v21 = vpop.f32.mrf.mxu3 }
 0x151   :  { %v318_v32 = vmax.f32 %v266_v26, 0.0  ;;  %v304_v48 = vadd.f32 %v303_v21, %v193_v22 }
 0x153   :  { %v325_v54 = vmax.f32 %v304_v48, 0.0 }
 0x156   :  { %v268_v25 = vpop.f32.mrf.mxu2 }
 0x157   :  { %v269_v27 = vadd.f32 %v268_v25, %v203_v16 }
 0x158   :  { %v306_v28 = vpop.f32.mrf.mxu3 }
 0x159   :  { %v319_v30 = vmax.f32 %v269_v27, 0.0  ;;  %v307_v44 = vadd.f32 %v306_v28, %v198_v19  ;;  %v383_v19 = vpop.permute.xlu1 %382 }
 0x15b   :  { %497 = vmatpush.msrb.mxu0 %v319_v30  ;;  %1058 = vmatpush.msra.mxu3 %v319_v30  ;;  %v326_v51 = vmax.f32 %v307_v44, 0.0 }
 0x15d   :  { %498 = vmatpush.msrb.mxu0 %v318_v32  ;;  %1059 = vmatpush.msra.mxu3 %v318_v32 }
 0x15f   :  { %499 = vmatpush.msrb.mxu0 %v317_v34  ;;  %1060 = vmatpush.msra.mxu3 %v317_v34 }
 0x160   :  { %v309_v40 = vpop.f32.mrf.mxu3 }
 0x161   :  { %v310_v43 = vadd.f32 %v309_v40, %v203_v16  ;;  %500 = vmatpush.msrb.mxu0 %v316_v38  ;;  %1061 = vmatpush.msra.mxu3 %v316_v38  ;;  %v378_v16 = vpop.permute.xlu0 %377  ;;  %v1420_v21 = vpop.permute.xlu1 %397 }
 0x162   :  { %v373_v38 = vpop.permute.xlu2 %372 }
 0x163   :  { %v327_v47 = vmax.f32 %v310_v43, 0.0  ;;  %501 = vmatpush.msrb.mxu0 %v315_v42  ;;  %1062 = vmatpush.msra.mxu3 %v315_v42 }
 0x165   :  { %502 = vmatpush.msrb.mxu0 %v314_v46  ;;  %1063 = vmatpush.msra.mxu3 %v314_v46 }
 0x166   :  { %1066 = vmatpush.msrb.mxu1 %v327_v47  ;;  %1067 = vmatpush.msrb.mxu2 %v327_v47 }
 0x167   :  { %503 = vmatpush.msrb.mxu0 %v313_v49  ;;  %1064 = vmatpush.msra.mxu3 %v313_v49 }
 0x168   :  { %1068 = vmatpush.msrb.mxu1 %v326_v51  ;;  %1069 = vmatpush.msrb.mxu2 %v326_v51 }
 0x169   :  { %504 = vmatpush.msrb.mxu0 %v312_v52  ;;  %1065 = vmatpush.msra.mxu3 %v312_v52  ;;  %v1416_v18 = vpop.permute.xlu0 %392  ;;  %v1424_v32 = vpop.permute.xlu1 %412 }
 0x16a   :  { %1070 = vmatpush.msrb.mxu1 %v325_v54  ;;  %1071 = vmatpush.msrb.mxu2 %v325_v54 }
 0x16b   :  { %1023 = vmatmul.msk.f32.vlgmr.msrb.gmra.mxu0 %vm440_vm3, %v1330_v55  ;;  %1035 = vmatmul.msk.f32.vlgmr.msra.gmra.mxu3 %vm440_vm3, %v340_v56 }
 0x16c   :  { %562 = vmatpush.msra.mxu0 %v327_v47  ;;  %1072 = vmatpush.msrb.mxu1 %v324_v58 }
 0x16d   :  { %1073 = vmatpush.msrb.mxu2 %v324_v58 }
 0x16e   :  { %563 = vmatpush.msra.mxu0 %v326_v51  ;;  %1074 = vmatpush.msrb.mxu1 %v323_v60 }
 0x16f   :  { %1075 = vmatpush.msrb.mxu2 %v323_v60 }
 0x170   :  { %564 = vmatpush.msra.mxu0 %v325_v54  ;;  %1076 = vmatpush.msrb.mxu1 %v322_v61 }
 0x171   :  { %1077 = vmatpush.msrb.mxu2 %v322_v61  ;;  %v1418_v20 = vpop.permute.xlu0 %407  ;;  %v1428_v46 = vpop.permute.xlu1 %427 }
 0x172   :  { %565 = vmatpush.msra.mxu0 %v324_v58  ;;  %1078 = vmatpush.msrb.mxu1 %v321_v63 }
 0x173   :  { %1079 = vmatpush.msrb.mxu2 %v321_v63  ;;  %1024 = vmatmul.msk.f32.gmra.mxu0 %vm440_vm3, %v329_v0 }
 0x174   :  { %1036 = vmatmul.msk.f32.gmra.mxu3 %vm440_vm3, %v341_v1  ;;  %566 = vmatpush.msra.mxu0 %v323_v60 }
 0x175   :  { %1080 = vmatpush.msrb.mxu1 %v320_v2  ;;  %1081 = vmatpush.msrb.mxu2 %v320_v2 }
 0x176   :  { %567 = vmatpush.msra.mxu0 %v322_v61  ;;  %1040 = vmatmul.msk.f32.vlgmr.msrb.gmra.mxu1 %vm440_vm3, %v329_v0 }
 0x177   :  { %1051 = vmatmul.msk.f32.vlgmr.msrb.gmra.mxu2 %vm440_vm3, %v340_v56 }
 0x178   :  { %568 = vmatpush.msra.mxu0 %v321_v63 }
 0x179   :  { %v423_v26 = vpop.permute.xlu0 %422 }
 0x17a   :  { %569 = vmatpush.msra.mxu0 %v320_v2 }
 0x17b   :  { %1025 = vmatmul.msk.f32.gmra.mxu0 %vm440_vm3, %v330_v3 }
 0x17c   :  { %1037 = vmatmul.msk.f32.gmra.mxu3 %vm440_vm3, %v342_v4 }
 0x17e   :  { %1041 = vmatmul.msk.f32.gmra.mxu1 %vm440_vm3, %v330_v3 }
 0x17f   :  { %1052 = vmatmul.msk.f32.gmra.mxu2 %vm440_vm3, %v341_v1 }
 0x183   :  { %1026 = vmatmul.msk.f32.gmra.mxu0 %vm440_vm3, %v331_v5 }
 0x184   :  { %1038 = vmatmul.msk.f32.gmra.mxu3 %vm440_vm3, %v343_v6 }
 0x186   :  { %1042 = vmatmul.msk.f32.gmra.mxu1 %vm440_vm3, %v331_v5 }
 0x187   :  { %1053 = vmatmul.msk.f32.gmra.mxu2 %vm440_vm3, %v342_v4 }
 0x18b   :  { %1027 = vmatmul.msk.f32.gmra.mxu0 %vm440_vm3, %v332_v7 }
 0x18e   :  { %1043 = vmatmul.msk.f32.gmra.mxu1 %vm440_vm3, %v332_v7  ;;  %v388_v7 = vpop.permute.xlu2 %387 }
 0x18f   :  { %1054 = vmatmul.msk.f32.gmra.mxu2 %vm440_vm3, %v343_v6 }
 0x193   :  { %1028 = vmatmul.msk.f32.gmra.mxu0 %vm440_vm3, %v333_v8 }
 0x196   :  { %1044 = vmatmul.msk.f32.gmra.mxu1 %vm440_vm3, %v333_v8 }
 0x19b   :  { %1029 = vmatmul.msk.f32.gmra.mxu0 %vm440_vm3, %v334_v9 }
 0x19e   :  { %1045 = vmatmul.msk.f32.gmra.mxu1 %vm440_vm3, %v334_v9 }
 0x1a3   :  { %1030 = vmatmul.msk.f32.gmra.mxu0 %vm440_vm3, %v335_v10 }
 0x1a6   :  { %1046 = vmatmul.msk.f32.gmra.mxu1 %vm440_vm3, %v335_v10 }
 0x1ab   :  { %1031 = vmatmul.msk.f32.gmra.mxu0 %vm440_vm3, %v336_v11 }
 0x1ae   :  { %1047 = vmatmul.msk.f32.gmra.mxu1 %vm440_vm3, %v336_v11 }
 0x1b3   :  { %1032 = vmatmul.msk.f32.gmra.mxu0 %vm440_vm3, %v337_v12 }
 0x1b6   :  { %1048 = vmatmul.msk.f32.gmra.mxu1 %vm440_vm3, %v337_v12 }
 0x1bb   :  { %1033 = vmatmul.msk.f32.gmra.mxu0 %vm440_vm3, %v338_v13 }
 0x1be   :  { %1049 = vmatmul.msk.f32.gmra.mxu1 %vm440_vm3, %v338_v13 }
 0x1c3   :  { %1034 = vmatmul.msk.f32.gmra.mxu0 %vm440_vm3, %v339_v14 }
 0x1c6   :  { %1050 = vmatmul.msk.f32.gmra.mxu1 %vm440_vm3, %v339_v14 }
 0x1cb   :  { %1039 = vmatmul.msk.f32.vlgmr.msra.gmra.mxu0 %vm440_vm3, %v1330_v55 }
 0x1e8   :  { %v506_v22 = vpop.f32.mrf.mxu0 }
 0x1e9   :  { %v507_v23 = vadd.f32 %v506_v22, %v1411_v15 }
 0x1eb   :  { %v619_v24 = vmax.f32 %v507_v23, 0.0 }
 0x1ed   :  { %v652_v25 = vsel %vm651_vm4, %v619_v24, -inf }
 0x1ee   :  { %v542_v27 = vpop.f32.mrf.mxu3  ;;  %653 = vmax.xlane.f32.xlu1 %v652_v25 }
 0x1ef   :  { %v543_v28 = vadd.f32 %v542_v27, %v423_v26 }
 0x1f0   :  { %v509_v29 = vpop.f32.mrf.mxu0 }
 0x1f1   :  { %v631_v30 = vmax.f32 %v543_v28, 0.0  ;;  %v510_v31 = vadd.f32 %v509_v29, %v368_v17 }
 0x1f3   :  { %v620_v33 = vmax.f32 %v510_v31, 0.0  ;;  %v574_v34 = vpop.f32.mrf.mxu1  ;;  %v688_v35 = vsel %vm651_vm4, %v631_v30, -inf }
 0x1f4   :  { %689 = vmax.xlane.f32.xlu0 %v688_v35  ;;  %v575_v36 = vadd.f32 %v574_v34, %v368_v17 }
 0x1f5   :  { %v655_v37 = vsel %vm651_vm4, %v620_v33, -inf }
 0x1f6   :  { %656 = vmax.xlane.f32.xlu2 %v655_v37  ;;  %v636_v40 = vmax.f32 %v575_v36, 0.0 }
 0x1f7   :  { %v545_v42 = vpop.f32.mrf.mxu3 }
 0x1f8   :  { %v512_v39 = vpop.f32.mrf.mxu0  ;;  %v546_v47 = vadd.f32 %v545_v42, %v1428_v46  ;;  %v703_v48 = vsel %vm651_vm4, %v636_v40, -inf }
 0x1f9   :  { %v513_v41 = vadd.f32 %v512_v39, %v373_v38 }
 0x1fa   :  { %v607_v44 = vpop.f32.mrf.mxu2  ;;  %v632_v52 = vmax.f32 %v546_v47, 0.0 }
 0x1fb   :  { %v621_v43 = vmax.f32 %v513_v41, 0.0  ;;  %v577_v45 = vpop.f32.mrf.mxu1  ;;  %v608_v50 = vadd.f32 %v607_v44, %v423_v26 }
 0x1fc   :  { %v578_v57 = vadd.f32 %v577_v45, %v373_v38  ;;  %v691_v59 = vsel %vm651_vm4, %v632_v52, -inf  ;;  %v403_v38 = vpop.permute.xlu2 %402 }
 0x1fd   :  { %v658_v49 = vsel %vm651_vm4, %v621_v43, -inf  ;;  %v647_v54 = vmax.f32 %v608_v50, 0.0 }
 0x1fe   :  { %704 = vmax.xlane.f32.xlu2 %v703_v48  ;;  %659 = vmax.xlane.f32.xlu1 %v658_v49  ;;  %v637_v63 = vmax.f32 %v578_v57, 0.0 }
 0x1ff   :  { %v736_v61 = vsel %vm651_vm4, %v647_v54, -inf }
 0x200   :  { %v515_v51 = vpop.f32.mrf.mxu0  ;;  %v706_v4 = vsel %vm651_vm4, %v637_v63, -inf }
 0x201   :  { %v516_v53 = vadd.f32 %v515_v51, %v378_v16 }
 0x202   :  { %v610_v54 = vpop.f32.mrf.mxu2 }
 0x203   :  { %v622_v55 = vmax.f32 %v516_v53, 0.0  ;;  %v580_v56 = vpop.f32.mrf.mxu1 }
 0x204   :  { %v581_v60 = vadd.f32 %v580_v56, %v378_v16 }
 0x205   :  { %v661_v58 = vsel %vm651_vm4, %v622_v55, -inf }
 0x206   :  { %662 = vmax.xlane.f32.xlu0 %v661_v58  ;;  %692 = vmax.xlane.f32.xlu2 %v691_v59  ;;  %v638_v0 = vmax.f32 %v581_v60, 0.0  ;;  %v418_v59 = vpop.permute.xlu2 %417 }
 0x207   :  { %737 = vmax.xlane.f32.xlu1 %v736_v61 }
 0x208   :  { %v518_v62 = vpop.f32.mrf.mxu0  ;;  %v709_v6 = vsel %vm651_vm4, %v638_v0, -inf }
 0x209   :  { %v519_v3 = vadd.f32 %v518_v62, %v383_v19 }
 0x20b   :  { %v583_v1 = vpop.f32.mrf.mxu1  ;;  %v623_v10 = vmax.f32 %v519_v3, 0.0 }
 0x20c   :  { %v584_v2 = vadd.f32 %v583_v1, %v383_v19 }
 0x20d   :  { %v664_v16 = vsel %vm651_vm4, %v623_v10, -inf }
 0x20e   :  { %v639_v5 = vmax.f32 %v584_v2, 0.0  ;;  %707 = vmax.xlane.f32.xlu2 %v706_v4  ;;  %v548_v4 = vpop.f32.mrf.mxu3 }
 0x20f   :  { %710 = vmax.xlane.f32.xlu1 %v709_v6 }
 0x210   :  { %v521_v8 = vpop.f32.mrf.mxu0  ;;  %v712_v9 = vsel %vm651_vm4, %v639_v5, -inf }
 0x211   :  { %v522_v11 = vadd.f32 %v521_v8, %v388_v7  ;;  %713 = vmax.xlane.f32.xlu0 %v712_v9 }
 0x213   :  { %v624_v12 = vmax.f32 %v522_v11, 0.0  ;;  %v586_v13 = vpop.f32.mrf.mxu1 }
 0x214   :  { %v587_v14 = vadd.f32 %v586_v13, %v388_v7  ;;  %v433_v7 = vpop.permute.xlu2 %432 }
 0x215   :  { %v667_v17 = vsel %vm651_vm4, %v624_v12, -inf  ;;  %v549_v9 = vadd.f32 %v548_v4, %v433_v7 }
 0x216   :  { %665 = vmax.xlane.f32.xlu2 %v664_v16  ;;  %v640_v22 = vmax.f32 %v587_v14, 0.0 }
 0x217   :  { %668 = vmax.xlane.f32.xlu1 %v667_v17  ;;  %v633_v14 = vmax.f32 %v549_v9, 0.0 }
 0x218   :  { %v524_v19 = vpop.f32.mrf.mxu0  ;;  %v715_v28 = vsel %vm651_vm4, %v640_v22, -inf  ;;  %v438_v22 = vpop.permute.xlu0 %437 }
 0x219   :  { %v525_v23 = vadd.f32 %v524_v19, %v1416_v18 }
 0x21b   :  { %v625_v24 = vmax.f32 %v525_v23, 0.0  ;;  %v589_v25 = vpop.f32.mrf.mxu1 }
 0x21c   :  { %v590_v26 = vadd.f32 %v589_v25, %v1416_v18 }
 0x21d   :  { %v670_v27 = vsel %vm651_vm4, %v625_v24, -inf  ;;  %v611_v24 = vadd.f32 %v610_v54, %v1428_v46 }
 0x21e   :  { %v641_v29 = vmax.f32 %v590_v26, 0.0  ;;  %671 = vmax.xlane.f32.xlu0 %v670_v27  ;;  %716 = vmax.xlane.f32.xlu2 %v715_v28  ;;  %v694_v27 = vsel %vm651_vm4, %v633_v14, -inf }
 0x220   :  { %v527_v30 = vpop.f32.mrf.mxu0  ;;  %v718_v31 = vsel %vm651_vm4, %v641_v29, -inf  ;;  %v648_v29 = vmax.f32 %v611_v24, 0.0 }
 0x221   :  { %v528_v33 = vadd.f32 %v527_v30, %v1420_v21  ;;  %719 = vmax.xlane.f32.xlu1 %v718_v31 }
 0x223   :  { %v626_v34 = vmax.f32 %v528_v33, 0.0  ;;  %v592_v35 = vpop.f32.mrf.mxu1  ;;  %v739_v33 = vsel %vm651_vm4, %v648_v29, -inf }
 0x224   :  { %v593_v36 = vadd.f32 %v592_v35, %v1420_v21 }
 0x225   :  { %v673_v37 = vsel %vm651_vm4, %v626_v34, -inf }
 0x226   :  { %v642_v18 = vmax.f32 %v593_v36, 0.0  ;;  %674 = vmax.xlane.f32.xlu2 %v673_v37  ;;  %v798_v36 = vlaneseq }
 0x228   :  { %v530_v39 = vpop.f32.mrf.mxu0  ;;  %v721_v40 = vsel %vm651_vm4, %v642_v18, -inf  ;;  %v1470_v37 = vand.u32 127, %v798_v36 }
 0x229   :  { %v531_v41 = vadd.f32 %v530_v39, %v403_v38  ;;  %722 = vmax.xlane.f32.xlu0 %v721_v40 }
 0x22a   :  { %v1473_v18 = vadd.s32 4294967288, %v1470_v37  ;;  %v1558_v14 = vadd.s32 4294967248, %v1470_v37 }
 0x22b   :  { %v627_v42 = vmax.f32 %v531_v41, 0.0  ;;  %v595_v43 = vpop.f32.mrf.mxu1 }
 0x22c   :  { %v596_v44 = vadd.f32 %v595_v43, %v403_v38 }
 0x22d   :  { %v676_v45 = vsel %vm651_vm4, %v627_v42, -inf }
 0x22e   :  { %v643_v47 = vmax.f32 %v596_v44, 0.0  ;;  %677 = vmax.xlane.f32.xlu1 %v676_v45 }
 0x230   :  { %v533_v48 = vpop.f32.mrf.mxu0  ;;  %v724_v21 = vsel %vm651_vm4, %v643_v47, -inf }
 0x231   :  { %v534_v49 = vadd.f32 %v533_v48, %v1418_v20  ;;  %725 = vmax.xlane.f32.xlu2 %v724_v21 }
 0x233   :  { %v628_v50 = vmax.f32 %v534_v49, 0.0  ;;  %v598_v51 = vpop.f32.mrf.mxu1 }
 0x234   :  { %v599_v52 = vadd.f32 %v598_v51, %v1418_v20  ;;  %v613_v20 = vpop.f32.mrf.mxu2 }
 0x235   :  { %v679_v53 = vsel %vm651_vm4, %v628_v50, -inf }
 0x236   :  { %v644_v55 = vmax.f32 %v599_v52, 0.0  ;;  %680 = vmax.xlane.f32.xlu0 %v679_v53  ;;  %v763_v52 = vld [vmem:[%s1704_s4 + $0x78] sm:$0xff]  ;;  %v762_v53 = vld [vmem:[%s1704_s4 + $0x70] sm:$0xff] }
 0x237   :  { %895 = vmatpush.msra.mxu2 %v763_v52  ;;  %v921_v52 = vld [vmem:[%s1705_s5 + $0x28] sm:$0xff] }
 0x238   :  { %v536_v56 = vpop.f32.mrf.mxu0  ;;  %v727_v57 = vsel %vm651_vm4, %v644_v55, -inf }
 0x239   :  { %v537_v58 = vadd.f32 %v536_v56, %v1424_v32  ;;  %728 = vmax.xlane.f32.xlu1 %v727_v57  ;;  %896 = vmatpush.msra.mxu2 %v762_v53  ;;  %v761_v57 = vld [vmem:[%s1704_s4 + $0x68] sm:$0xff] }
 0x23b   :  { %v629_v60 = vmax.f32 %v537_v58, 0.0  ;;  %v601_v61 = vpop.f32.mrf.mxu1  ;;  %897 = vmatpush.msra.mxu2 %v761_v57  ;;  %v760_v58 = vld [vmem:[%s1704_s4 + $0x60] sm:$0xff] }
 0x23c   :  { %v602_v62 = vadd.f32 %v601_v61, %v1424_v32  ;;  %v614_v32 = vadd.f32 %v613_v20, %v433_v7  ;;  %v616_v17 = vpop.f32.mrf.mxu2  ;;  %v756_v20 = vld [vmem:[%s1704_s4 + $0x40] sm:$0xff] }
 0x23d   :  { %v682_v63 = vsel %vm651_vm4, %v629_v60, -inf  ;;  %v617_v25 = vadd.f32 %v616_v17, %v438_v22  ;;  %898 = vmatpush.msra.mxu2 %v760_v58  ;;  %v758_v60 = vld [vmem:[%s1704_s4 + $0x50] sm:$0xff]  ;;  %v751_v17 = vld [vmem:[%s1704_s4 + $0x18] sm:$0xff] }
 0x23e   :  { %v645_v0 = vmax.f32 %v602_v62, 0.0  ;;  %683 = vmax.xlane.f32.xlu2 %v682_v63  ;;  %v649_v23 = vmax.f32 %v614_v32, 0.0  ;;  %v1551_v32 = vadd.s32 4294967256, %v1470_v37 }
 0x23f   :  { %v650_v30 = vmax.f32 %v617_v25, 0.0 }
 0x240   :  { %v539_v1 = vpop.f32.mrf.mxu0  ;;  %v730_v2 = vsel %vm651_vm4, %v645_v0, -inf  ;;  %v742_v28 = vsel %vm651_vm4, %v649_v23, -inf  ;;  %v757_v0 = vld [vmem:[%s1704_s4 + $0x48] sm:$0xff] }
 0x241   :  { %v540_v3 = vadd.f32 %v539_v1, %v418_v59  ;;  %731 = vmax.xlane.f32.xlu0 %v730_v2  ;;  %v745_v34 = vsel %vm651_vm4, %v650_v30, -inf  ;;  %v755_v1 = vld [vmem:[%s1704_s4 + $0x38] sm:$0xff]  ;;  %v1530_v2 = vadd.s32 4294967280, %v1470_v37 }
 0x243   :  { %v630_v5 = vmax.f32 %v540_v3, 0.0  ;;  %v604_v6 = vpop.f32.mrf.mxu1 }
 0x244   :  { %v605_v8 = vadd.f32 %v604_v6, %v418_v59  ;;  %v759_v59 = vld [vmem:[%s1704_s4 + $0x58] sm:$0xff]  ;;  %v1538_v6 = vadd.s32 4294967272, %v1470_v37 }
 0x245   :  { %v685_v10 = vsel %vm651_vm4, %v630_v5, -inf  ;;  %899 = vmatpush.msra.mxu2 %v759_v59  ;;  %v754_v5 = vld [vmem:[%s1704_s4 + $0x30] sm:$0xff] }
 0x246   :  { %v646_v11 = vmax.f32 %v605_v8, 0.0  ;;  %686 = vmax.xlane.f32.xlu1 %v685_v10  ;;  %v753_v8 = vld [vmem:[%s1704_s4 + $0x28] sm:$0xff]  ;;  %v1547_v10 = vadd.s32 4294967264, %v1470_v37 }
 0x247   :  { %900 = vmatpush.msra.mxu2 %v758_v60  ;;  %v920_v60 = vld [vmem:[%s1705_s5 + $0x20] sm:$0xff] }
 0x248   :  { %v571_v12 = vpop.f32.mrf.mxu0  ;;  %v733_v13 = vsel %vm651_vm4, %v646_v11, -inf }
 0x249   :  { %v572_v16 = vadd.f32 %v571_v12, %v1411_v15  ;;  %734 = vmax.xlane.f32.xlu2 %v733_v13  ;;  %v551_v15 = vpop.f32.mrf.mxu3  ;;  %901 = vmatpush.msra.mxu2 %v757_v0  ;;  %v752_v12 = vld [vmem:[%s1704_s4 + $0x20] sm:$0xff] }
 0x24a   :  { %v552_v31 = vadd.f32 %v551_v15, %v438_v22  ;;  %v1568_v22 = vadd.s32 4294967232, %v1470_v37  ;;  %v1585_v15 = vadd.s32 4294967216, %v1470_v37 }
 0x24b   :  { %v635_v19 = vmax.f32 %v572_v16, 0.0  ;;  %902 = vmatpush.msra.mxu2 %v756_v20  ;;  %v1561_v16 = vadd.s32 4294967240, %v1470_v37  ;;  %v919_v20 = vld [vmem:[%s1705_s5 + $0x18] sm:$0xff] }
 0x24c   :  { %v634_v46 = vmax.f32 %v552_v31, 0.0 }
 0x24d   :  { %v700_v26 = vsel %vm651_vm4, %v635_v19, -inf  ;;  %903 = vmatpush.msra.mxu2 %v755_v1 }
 0x24e   :  { %701 = vmax.xlane.f32.xlu0 %v700_v26  ;;  %695 = vmax.xlane.f32.xlu1 %v694_v27  ;;  %v697_v35 = vsel %vm651_vm4, %v634_v46, -inf  ;;  %v1576_v27 = vadd.s32 4294967224, %v1470_v37  ;;  %v748_v46 = vld [vmem:[%s1704_s4] sm:$0xff]  ;;  %vm855_vm4 = vcmask 982912  }
 0x24f   :  { %904 = vmatpush.msra.mxu2 %v754_v5 }
 0x251   :  { %743 = vmax.xlane.f32.xlu2 %v742_v28  ;;  %905 = vmatpush.msra.mxu2 %v753_v8  ;;  %v750_v28 = vld [vmem:[%s1704_s4 + $0x10] sm:$0xff] }
 0x253   :  { %906 = vmatpush.msra.mxu2 %v752_v12 }
 0x255   :  { %907 = vmatpush.msra.mxu2 %v751_v17 }
 0x256   :  { %740 = vmax.xlane.f32.xlu0 %v739_v33  ;;  %746 = vmax.xlane.f32.xlu1 %v745_v34  ;;  %v749_v34 = vld [vmem:[%s1704_s4 + $0x8] sm:$0xff] }
 0x257   :  { %908 = vmatpush.msra.mxu2 %v750_v28 }
 0x259   :  { %909 = vmatpush.msra.mxu2 %v749_v34 }
 0x25b   :  { %910 = vmatpush.msra.mxu2 %v748_v46 }
 0x25e   :  { %698 = vmax.xlane.f32.xlu0 %v697_v35 }
 0x261   :  { %v654_v38 = vpop.xlane.xlu1 %653 }
 0x262   :  { %v800_v40 = vperm.slane %v654_v38, %v1470_v37 }
 0x267   :  { %v1486_v21 = vpop.xlane.xlu0 %689 }
 0x269   :  { %v657_v39 = vpop.xlane.xlu2 %656 }
 0x26a   :  { %v802_v41 = vperm.slane %v657_v39, %v1473_v18  ;;  %v841_v39 = vadd.s32 4294967208, %v1470_v37 }
 0x26c   :  { %v804_v42 = vsel %vm803_vm5, %v802_v41, %v800_v40  ;;  %v923_v40 = vld [vmem:[%s1705_s5 + $0x38] sm:$0xff]  ;;  %v922_v41 = vld [vmem:[%s1705_s5 + $0x30] sm:$0xff] }
 0x26d   :  { %937 = vmatpush.msrb.mxu3 %v923_v40 }
 0x26f   :  { %938 = vmatpush.msrb.mxu3 %v922_v41 }
 0x271   :  { %v1478_v43 = vpop.xlane.xlu2 %704  ;;  %v660_v44 = vpop.xlane.xlu1 %659  ;;  %939 = vmatpush.msrb.mxu3 %v921_v52  ;;  %v1087_v52 = vld [vmem:[%s1708_s8] ss:$0 sm:$0xff] }
 0x272   :  { %v806_v9 = vperm.slane %v660_v44, %v1530_v2  ;;  %v862_v5 = vperm.slane %v1478_v43, %v1473_v18 }
 0x273   :  { %940 = vmatpush.msrb.mxu3 %v920_v60  ;;  %v950_v60 = vld [vmem:[%s1706_s6] sm:$0xff] }
 0x274   :  { %v808_v19 = vsel %vm807_vm6, %v806_v9, %v804_v42  ;;  %v1606_v42 = vadd.s32 4294967200, %v1470_v37 }
 0x275   :  { %941 = vmatpush.msrb.mxu3 %v919_v20 }
 0x279   :  { %v1480_v45 = vpop.xlane.xlu2 %692  ;;  %v663_v51 = vpop.xlane.xlu0 %662 }
 0x27a   :  { %v1482_v47 = vpop.xlane.xlu1 %737  ;;  %v810_v11 = vperm.slane %v663_v51, %v1538_v6 }
 0x27c   :  { %v812_v25 = vsel %vm811_vm7, %v810_v11, %v808_v19 }
 0x281   :  { %v1484_v48 = vpop.xlane.xlu2 %707 }
 0x282   :  { %v1488_v49 = vpop.xlane.xlu1 %710  ;;  %v864_v9 = vperm.slane %v1484_v48, %v1530_v2 }
 0x283   :  { %v866_v11 = vperm.slane %v1488_v49, %v1538_v6 }
 0x284   :  { %v1496_v54 = vpop.xlane.xlu0 %713 }
 0x289   :  { %v666_v50 = vpop.xlane.xlu2 %665 }
 0x28a   :  { %v1498_v55 = vpop.xlane.xlu1 %668  ;;  %v814_v13 = vperm.slane %v666_v50, %v1547_v10 }
 0x28b   :  { %v818_v26 = vperm.slane %v1498_v55, %v1551_v32 }
 0x28c   :  { %v816_v29 = vsel %vm815_vm8, %v814_v13, %v812_v25  ;;  %v868_v13 = vperm.slane %v1496_v54, %v1547_v10 }
 0x28d   :  { %v820_v36 = vsel %vm819_vm9, %v818_v26, %v816_v29  ;;  %v857_v29 = vadd.s32 4294967176, %v1470_v37 }
 0x291   :  { %v1500_v56 = vpop.xlane.xlu2 %716  ;;  %v1514_v61 = vpop.xlane.xlu0 %671 }
 0x292   :  { %v822_v30 = vperm.slane %v1514_v61, %v1558_v14  ;;  %v846_v61 = vperm.slane %v1486_v21, %v1606_v42  ;;  %v870_v18 = vperm.slane %v1500_v56, %v1551_v32 }
 0x294   :  { %v1516_v62 = vpop.xlane.xlu1 %719  ;;  %v824_v44 = vsel %vm823_vm10, %v822_v30, %v820_v36 }
 0x299   :  { %v1518_v63 = vpop.xlane.xlu2 %674 }
 0x29a   :  { %v826_v31 = vperm.slane %v1518_v63, %v1561_v16 }
 0x29c   :  { %v1532_v3 = vpop.xlane.xlu0 %722  ;;  %v828_v51 = vsel %vm827_vm11, %v826_v31, %v824_v44  ;;  %v918_v44 = vld [vmem:[%s1705_s5 + $0x10] sm:$0xff] }
 0x29d   :  { %v874_v49 = vperm.slane %v1532_v3, %v1561_v16  ;;  %v849_v3 = vadd.s32 4294967192, %v1470_v37  ;;  %942 = vmatpush.msrb.mxu3 %v918_v44 }
 0x29f   :  { %v850_v34 = vperm.slane %v1480_v45, %v849_v3  ;;  %v917_v45 = vld [vmem:[%s1705_s5 + $0x8] sm:$0xff] }
 0x2a0   :  { %943 = vmatpush.msrb.mxu3 %v917_v45 }
 0x2a1   :  { %v678_v4 = vpop.xlane.xlu1 %677 }
 0x2a2   :  { %v830_v35 = vperm.slane %v678_v4, %v1568_v22 }
 0x2a4   :  { %v1540_v7 = vpop.xlane.xlu2 %725  ;;  %v832_v53 = vsel %vm831_vm12, %v830_v35, %v828_v51  ;;  %v953_v51 = vld [vmem:[%s1706_s6 + $0x18] sm:$0xff] }
 0x2a5   :  { %v876_v54 = vperm.slane %v1540_v7, %v1568_v22  ;;  %v884_v22 = vperm.slane %v1482_v47, %v1606_v42  ;;  %971 = vmatpush.msrb.mxu2 %v953_v51 }
 0x2a9   :  { %v681_v23 = vpop.xlane.xlu0 %680 }
 0x2aa   :  { %v834_v38 = vperm.slane %v681_v23, %v1576_v27  ;;  %v872_v23 = vperm.slane %v1516_v62, %v1558_v14  ;;  %v853_v14 = vadd.s32 4294967184, %v1470_v37 }
 0x2ac   :  { %v1570_v24 = vpop.xlane.xlu1 %728  ;;  %v836_v58 = vsel %vm835_vm13, %v834_v38, %v832_v53 }
 0x2ad   :  { %v878_v56 = vperm.slane %v1570_v24, %v1576_v27 }
 0x2b1   :  { %v684_v33 = vpop.xlane.xlu2 %683 }
 0x2b2   :  { %v838_v50 = vperm.slane %v684_v33, %v1585_v15 }
 0x2b4   :  { %v732_v55 = vpop.xlane.xlu0 %731  ;;  %v840_v63 = vsel %vm839_vm14, %v838_v50, %v836_v58  ;;  %v916_v50 = vld [vmem:[%s1705_s5] sm:$0xff]  ;;  %v952_v58 = vld [vmem:[%s1706_s6 + $0x10] sm:$0xff] }
 0x2b5   :  { %v880_v62 = vperm.slane %v732_v55, %v1585_v15  ;;  %944 = vmatpush.msrb.mxu3 %v916_v50  ;;  %972 = vmatpush.msrb.mxu2 %v952_v58 }
 0x2b9   :  { %v687_v57 = vpop.xlane.xlu1 %686 }
 0x2ba   :  { %v842_v59 = vperm.slane %v687_v57, %v841_v39 }
 0x2bc   :  { %v844_v0 = vsel %vm843_vm15, %v842_v59, %v840_v63  ;;  %v735_v8 = vpop.xlane.xlu2 %734  ;;  %v951_v59 = vld [vmem:[%s1706_s6 + $0x8] sm:$0xff]  ;;  %s988_s6 = sshll.u32 %s1709_s9, 4  ;;  %s989_s6 = int_to_ptr.hbm [resolvable:$true] %s988_s6 }
 0x2bd   :  { %v848_v1 = vsel %vm847_vm0, %v846_v61, %v844_v0  ;;  %v882_v16 = vperm.slane %v735_v8, %v841_v39  ;;  %973 = vmatpush.msrb.mxu2 %v951_v59  ;;  %v1088_v61 = vld [vmem:[%s1708_s8 + $0x1] ss:$0 sm:$0xff] }
 0x2be   :  { %v852_v36 = vsel %vm851_vm1, %v850_v34, %v848_v1  ;;  %v1089_v1 = vld [vmem:[%s1708_s8 + $0x2] ss:$0 sm:$0xff] }
 0x2bf   :  { %974 = vmatpush.msrb.mxu2 %v950_v60 }
 0x2c1   :  { %v702_v4 = vpop.xlane.xlu0 %701  ;;  %v696_v19 = vpop.xlane.xlu1 %695 }
 0x2c2   :  { %v861_v21 = vperm.slane %v702_v4, %v1470_v37  ;;  %v854_v30 = vperm.slane %v696_v19, %v853_v14 }
 0x2c4   :  { %v863_v12 = vsel %vm803_vm5, %v862_v5, %v861_v21  ;;  %v744_v26 = vpop.xlane.xlu2 %743  ;;  %vm859_vm5 = vcmask 1048512   ;;  %v856_v40 = vsel %vm855_vm4, %v854_v30, %v852_v36 }
 0x2c5   :  { %v865_v17 = vsel %vm807_vm6, %v864_v9, %v863_v12  ;;  %v888_v15 = vperm.slane %v744_v26, %v853_v14  ;;  %vm892_vm6 = vcmask 1041409  }
 0x2c6   :  { %v867_v43 = vsel %vm811_vm7, %v866_v11, %v865_v17 }
 0x2c7   :  { %v869_v48 = vsel %vm815_vm8, %v868_v13, %v867_v43 }
 0x2c8   :  { %v871_v2 = vsel %vm819_vm9, %v870_v18, %v869_v48 }
 0x2c9   :  { %v873_v6 = vsel %vm823_vm10, %v872_v23, %v871_v2  ;;  %v741_v10 = vpop.xlane.xlu0 %740  ;;  %v747_v33 = vpop.xlane.xlu1 %746 }
 0x2ca   :  { %v875_v32 = vsel %vm827_vm11, %v874_v49, %v873_v6  ;;  %v886_v27 = vperm.slane %v741_v10, %v849_v3  ;;  %v890_v38 = vperm.slane %v747_v33, %v857_v29 }
 0x2cb   :  { %v877_v25 = vsel %vm831_vm12, %v876_v54, %v875_v32 }
 0x2cc   :  { %v879_v7 = vsel %vm835_vm13, %v878_v56, %v877_v25 }
 0x2cd   :  { %v881_v28 = vsel %vm839_vm14, %v880_v62, %v879_v7 }
 0x2ce   :  { %v883_v24 = vsel %vm843_vm15, %v882_v16, %v881_v28 }
 0x2cf   :  { %v885_v31 = vsel %vm847_vm0, %v884_v22, %v883_v24 }
 0x2d0   :  { %v887_v46 = vsel %vm851_vm1, %v886_v27, %v885_v31 }
 0x2d1   :  { %v889_v35 = vsel %vm855_vm4, %v888_v15, %v887_v46  ;;  %v699_v47 = vpop.xlane.xlu0 %698 }
 0x2d2   :  { %v858_v39 = vperm.slane %v699_v47, %v857_v29  ;;  %v891_v41 = vsel %vm859_vm5, %v890_v38, %v889_v35 }
 0x2d4   :  { %v860_v37 = vsel %vm859_vm5, %v858_v39, %v856_v40 }
 0x2d5   :  { %v893_v42 = vsel %vm892_vm6, %v891_v41, %v860_v37 }
 0x2d6   :  { %911 = vmatmul.f32.vlgmr.msra.gmra.mxu2 %v893_v42 }
 0x359   :  { %v912_v53 = vpop.f32.mrf.mxu2 }
 0x35a   :  { %v913_v55 = vadd.f32 %v1087_v52, %v912_v53 }
 0x35c   :  { %v915_v57 = vmax.f32 %v913_v55, 0.0 }
 0x35e   :  { %1055 = vmatmul.msk.f32.vlgmr.msrb.gmra.mxu3 %vm440_vm3, %v915_v57  ;;  %vm979_vm3 = vcmask 123904  }
 0x3e1   :  { %v946_v63 = vpop.f32.mrf.mxu3 }
 0x3e2   :  { %v947_v0 = vadd.f32 %v1088_v61, %v946_v63 }
 0x3e4   :  { %v949_v20 = vmax.f32 %v947_v0, 0.0 }
 0x3e6   :  { %1056 = vmatmul.msk.f32.vlgmr.msrb.gmra.mxu2 %vm205_vm2, %v949_v20 }
 0x469   :  { %v976_v4 = vpop.f32.mrf.mxu2 }
 0x46a   :  { %v977_v5 = vadd.f32 %v1089_v1, %v976_v4 }
 0x46c   :  { %980 = vst.msk [vmem:[#allocation2] sm:$0x3] %vm979_vm3, %v977_v5 }
 0x46d   :  { %991 = dma.vmem_to_hbm [thread:$0]  %s987_s14, 32, %s989_s6, [#allocation3]  }
 0x46e   :  { %1114 = dma.done.wait [#allocation3], 32  }
 0x46f   :  { %1115 = vsyncadd [#allocation3], 4294967264 }
 0x470   :  { %996 = vsyncpa [#allocation3], 1 }

</bundles_post_ra>
